<compile_context>
chip_gen: v7x
topology: tpu7x:2x2x1
jax: 0.10.0
libtpu: 0.0.40
codegen_flags: <defaults>
</compile_context>

<pallas_src>
import functools

import jax
import jax.numpy as jnp
from jax.experimental import pallas as pl
from jax.experimental.pallas import tpu as pltpu

LN_EPS = 1e-5  # torch.nn.LayerNorm default


def _round_up(n, m):
    return ((n + m - 1) // m) * m


def _fused_mlp_kernel(*refs, layers, matmul_dtype):
    """Whole FCEncoder stack on one batch tile.

    refs = (x_ref, *param_refs, o_ref).  Per layer, param_refs contributes:
      weight, then (bias,) if the layer has a bias, then (gamma, beta) if LN.
    `layers` is a static tuple of (use_bias, use_ln, use_relu) per layer.

    Ragged last batch tile: rows past the true batch end hold undefined data, but
    every op below is row-wise (matmul / LayerNorm / ReLU), so garbage never leaks
    into valid rows, and Pallas drops the out-of-bounds part of the final store.
    """
    x_ref = refs[0]
    o_ref = refs[-1]
    p_refs = refs[1:-1]

    # Exact f32 matmul semantics (matches PyTorch fp32) on the f32 path; default
    # (fast bf16-operand) MXU passes otherwise.
    mm_precision = (jax.lax.Precision.HIGHEST
                    if matmul_dtype == jnp.float32 else None)

    h = x_ref[...]
    idx = 0
    for (use_bias, use_ln, use_relu) in layers:
        w_ref = p_refs[idx]
        idx += 1
        # MXU matmul: in-register cast of activations to the MXU dtype, f32 accumulate.
        y = jnp.dot(h.astype(matmul_dtype), w_ref[...],
                    preferred_element_type=jnp.float32,
                    precision=mm_precision)
        if use_bias:
            b_ref = p_refs[idx]
            idx += 1
            y = y + b_ref[...]                           # (1, D_out) broadcast
        if use_ln:
            g_ref = p_refs[idx]
            beta_ref = p_refs[idx + 1]
            idx += 2
            # mean/var -> XLU, rsqrt -> EUP: free-ish slots next to MXU/DMA work.
            mean = jnp.mean(y, axis=-1, keepdims=True)
            var = jnp.mean((y - mean) * (y - mean), axis=-1, keepdims=True)
            y = (y - mean) * jax.lax.rsqrt(var + LN_EPS)
            y = y * g_ref[...] + beta_ref[...]
        if use_relu:
            y = jnp.maximum(y, 0.0)
        h = y
    # TODO(synk): D_out=32 (<128 lanes) makes this a masked store; only if a profile
    # shows vst-slot saturation, relayout to a lane-dense (TB//4, 128) output slab
    # (pltpu.einshape) and reshape back in the wrapper.
    o_ref[...] = h.astype(o_ref.dtype)


def prepare_fc_encoder_params(params, matmul_dtype):
    """Pre-cast weights to the MXU dtype ONCE (avoids per-forward cast ops)."""
    return [dict(p, w=p["w"].astype(matmul_dtype)) for p in params]


def fc_encoder_forward(x, params, *, use_batch_norm, use_layer_norm,
                       activation_last, matmul_dtype=jnp.float32,
                       out_dtype=jnp.float32, batch_tile=2048):
    """Fused forward pass: one pallas_call for the whole MLP, batch-tiled grid.

    matmul_dtype=jnp.bfloat16 is recommended on all TPU generations (v5e/v6e/v7x);
    only LN/ReLU need f32 and they stay f32 via preferred_element_type.
    """
    assert not (use_batch_norm and use_layer_norm)
    # TODO(synk): BatchNorm1d running-statistics (training-mode momentum update)
    # path is not implemented; only LayerNorm / no-norm configurations run.
    assert not use_batch_norm, "BatchNorm1d path not implemented"
    use_norm = use_batch_norm or use_layer_norm
    n_layers = len(params)

    B, D_in = x.shape
    D_out = params[-1]["w"].shape[1]

    # --- Batch tile selection -------------------------------------------------
    # Sublane tile of the MXU operand dtype (bf16 packs 16 rows per vreg).
    sub = 16 if matmul_dtype == jnp.bfloat16 else 8
    # Big tiles amortize the ~0.35us/step overhead; weights/LN params are KiB-scale
    # so even TB=4096 keeps total VMEM in the low single-digit MiB.
    TB = _round_up(min(batch_tile, B), sub)
    # Keep >= MIN_TILES grid steps when the batch is big enough so the "parallel"
    # grid axis can shard across v7x's two TensorCores and keep the pipeline full.
    MIN_TILES = 4
    if B >= 2 * sub * MIN_TILES:
        TB = min(TB, _round_up(pl.cdiv(B, MIN_TILES), sub))
    TB = max(TB, sub)
    # Ragged last tile is handled by Pallas (padded reads, masked writes): no jnp.pad
    # HBM copy of x, no post-slice of the output.
    grid = (pl.cdiv(B, TB),)

    def batch_spec(d):
        return pl.BlockSpec((TB, d), lambda i: (i, 0))

    def const_spec(shape):
        # Constant block index -> stays VMEM-resident across all grid steps.
        return pl.BlockSpec(shape, lambda i: (0, 0))

    layers = []
    operands = [x]
    in_specs = [batch_spec(D_in)]
    for i, p in enumerate(params):
        last = i == n_layers - 1
        apply_act = (not last) or activation_last
        use_bias = not use_norm
        use_ln = use_layer_norm and apply_act
        use_relu = apply_act
        layers.append((use_bias, use_ln, use_relu))

        w = p["w"]
        if w.dtype != matmul_dtype:
            # Cheap (KiB-scale) fallback; prefer prepare_fc_encoder_params() once.
            w = w.astype(matmul_dtype)
        operands.append(w)
        in_specs.append(const_spec(w.shape))
        if use_bias:
            operands.append(p["b"])
            in_specs.append(const_spec(p["b"].shape))
        if use_ln:
            operands.append(p["gamma"])
            in_specs.append(const_spec(p["gamma"].shape))
            operands.append(p["beta"])
            in_specs.append(const_spec(p["beta"].shape))

    kernel = functools.partial(_fused_mlp_kernel, layers=tuple(layers),
                               matmul_dtype=matmul_dtype)

    out = pl.pallas_call(
        kernel,
        out_shape=jax.ShapeDtypeStruct((B, D_out), out_dtype),
        grid=grid,
        in_specs=in_specs,
        out_specs=batch_spec(D_out),
        compiler_params=pltpu.CompilerParams(
            dimension_semantics=("parallel",)),   # dual-TC v7x shards batch tiles
    )(*operands)
    return out


def init_fc_encoder_params(key, input_size, neurons):
    """Deterministic init mirroring FCEncoder.__init__ (kaiming_normal fan_in/relu)."""
    params = []
    dims = [input_size] + list(neurons)
    for i in range(len(neurons)):
        fan_in, fan_out = dims[i], dims[i + 1]
        key, wk = jax.random.split(key)
        std = (2.0 / fan_in) ** 0.5  # kaiming_normal_, mode='fan_in', relu
        w = jax.random.normal(wk, (fan_in, fan_out), dtype=jnp.float32) * std
        b = jnp.zeros((1, fan_out), dtype=jnp.float32)      # nn.init.constant_(bias, 0)
        gamma = jnp.ones((1, fan_out), dtype=jnp.float32)   # norm weight = 1
        beta = jnp.zeros((1, fan_out), dtype=jnp.float32)   # norm bias = 0
        params.append(dict(w=w, b=b, gamma=gamma, beta=beta))
    return params


def fc_encoder_reference(x, params, *, use_batch_norm, use_layer_norm,
                         activation_last):
    """Pure-JAX f32 reference matching the PyTorch forward."""
    use_norm = use_batch_norm or use_layer_norm
    n_layers = len(params)
    for i, p in enumerate(params):
        last = i == n_layers - 1
        y = x @ p["w"]
        if not use_norm:
            y = y + p["b"]
        if (not last) or activation_last:
            if use_layer_norm:
                mean = jnp.mean(y, axis=-1, keepdims=True)
                var = jnp.mean((y - mean) ** 2, axis=-1, keepdims=True)
                y = (y - mean) / jnp.sqrt(var + LN_EPS)
                y = y * p["gamma"] + p["beta"]
            y = jnp.maximum(y, 0.0)
        x = y
    return x


if __name__ == "__main__":
    # Config (mirrors the PyTorch module's config dict)
    config = dict(
        input_size=32,
        neurons=[64, 64, 32],
        use_batch_norm=False,
        use_layer_norm=True,
        activation_last=False,
    )
    fwd_kwargs = dict(
        use_batch_norm=config["use_batch_norm"],
        use_layer_norm=config["use_layer_norm"],
        activation_last=config["activation_last"],
    )

    key = jax.random.PRNGKey(0)
    key, pkey, xkey = jax.random.split(key, 3)
    params = init_fc_encoder_params(pkey, config["input_size"], config["neurons"])

    # --- Test 1: tiny batch, f32 matmul path (HIGHEST precision, PyTorch-faithful). ---
    batch = 2
    x = jax.random.normal(xkey, (batch, config["input_size"]), dtype=jnp.float32)
    out = fc_encoder_forward(x, params, matmul_dtype=jnp.float32, **fwd_kwargs)
    out = jax.block_until_ready(out)
    ref = fc_encoder_reference(x, params, **fwd_kwargs)
    assert out.shape == (batch, config["neurons"][-1])
    assert jnp.allclose(out, ref, atol=1e-4, rtol=1e-4), "f32 path mismatch vs reference"

    # --- Test 2: multi-tile batch grid, bf16 MXU operands + bf16 output. ---
    key, xkey2 = jax.random.split(key)
    batch2 = 64
    x2 = jax.random.normal(xkey2, (batch2, config["input_size"]), dtype=jnp.float32)
    params_bf16 = prepare_fc_encoder_params(params, jnp.bfloat16)  # cast weights once
    out2 = fc_encoder_forward(x2, params_bf16, matmul_dtype=jnp.bfloat16,
                              out_dtype=jnp.bfloat16, batch_tile=16,  # 4 batch tiles
                              **fwd_kwargs)
    out2 = jax.block_until_ready(out2)
    ref2 = fc_encoder_reference(x2, params, **fwd_kwargs)
    assert out2.shape == (batch2, config["neurons"][-1])
    assert jnp.allclose(out2.astype(jnp.float32), ref2, atol=5e-2, rtol=5e-2), \
        "bf16 path mismatch vs reference"

    # --- Test 3: ragged batch (B % TB != 0) exercises padded-read / masked-write
    #     last block — no jnp.pad copy anywhere. ---
    key, xkey3 = jax.random.split(key)
    batch3 = 100
    x3 = jax.random.normal(xkey3, (batch3, config["input_size"]), dtype=jnp.float32)
    out3 = fc_encoder_forward(x3, params, matmul_dtype=jnp.float32,
                              batch_tile=32, **fwd_kwargs)   # grid of 4, last ragged
    out3 = jax.block_until_ready(out3)
    ref3 = fc_encoder_reference(x3, params, **fwd_kwargs)
    assert out3.shape == (batch3, config["neurons"][-1])
    assert jnp.allclose(out3, ref3, atol=1e-4, rtol=1e-4), "ragged path mismatch vs reference"

    print("KERNEL_OK")
</pallas_src>

<mosaic_0001>
module attributes {stable_mosaic.version = 11 : i64} {
  func.func @_fused_mlp_kernel(%arg0: i32, %arg1: memref<8x32xf32, #tpu.memory_space<vmem>>, %arg2: memref<32x64xf32, #tpu.memory_space<vmem>>, %arg3: memref<1x64xf32, #tpu.memory_space<vmem>>, %arg4: memref<1x64xf32, #tpu.memory_space<vmem>>, %arg5: memref<64x64xf32, #tpu.memory_space<vmem>>, %arg6: memref<1x64xf32, #tpu.memory_space<vmem>>, %arg7: memref<1x64xf32, #tpu.memory_space<vmem>>, %arg8: memref<64x32xf32, #tpu.memory_space<vmem>>, %arg9: memref<8x32xf32, #tpu.memory_space<vmem>>) attributes {dimension_semantics = [#tpu.dimension_semantics<parallel>], iteration_bounds = array<i64: 1>, scalar_prefetch = 0 : i64, scratch_operands = 0 : i64, tpu.core_type = #tpu.core_type<tc>, window_params = [{transform_indices = @transform_0, window_bounds = array<i64: 8, 32>}, {pipeline_mode = #tpu.pipeline_mode<synchronous>, transform_indices = @transform_1, window_bounds = array<i64: 32, 64>}, {pipeline_mode = #tpu.pipeline_mode<synchronous>, transform_indices = @transform_2, window_bounds = array<i64: 1, 64>}, {pipeline_mode = #tpu.pipeline_mode<synchronous>, transform_indices = @transform_3, window_bounds = array<i64: 1, 64>}, {pipeline_mode = #tpu.pipeline_mode<synchronous>, transform_indices = @transform_4, window_bounds = array<i64: 64, 64>}, {pipeline_mode = #tpu.pipeline_mode<synchronous>, transform_indices = @transform_5, window_bounds = array<i64: 1, 64>}, {pipeline_mode = #tpu.pipeline_mode<synchronous>, transform_indices = @transform_6, window_bounds = array<i64: 1, 64>}, {pipeline_mode = #tpu.pipeline_mode<synchronous>, transform_indices = @transform_7, window_bounds = array<i64: 64, 32>}, {transform_indices = @transform_8, window_bounds = array<i64: 8, 32>}]} {
    %c0 = arith.constant 0 : index
    %c0_0 = arith.constant 0 : index
    %0 = vector.load %arg1[%c0, %c0_0] : memref<8x32xf32, #tpu.memory_space<vmem>>, vector<8x32xf32>
    %c0_1 = arith.constant 0 : index
    %c0_2 = arith.constant 0 : index
    %1 = vector.load %arg2[%c0_1, %c0_2] : memref<32x64xf32, #tpu.memory_space<vmem>>, vector<32x64xf32>
    %cst = arith.constant dense<0.000000e+00> : vector<8x64xf32>
    %2 = tpu.matmul %0, %1, %cst {dimension_numbers = #tpu.dot_dimension_numbers<[1], [0], [0], [1], [0, 0, 1, 1], [], []>, precision = #tpu.contract_precision<fp32>} : vector<8x32xf32>, vector<32x64xf32>, vector<8x64xf32> -> vector<8x64xf32>
    %cst_3 = arith.constant dense<0.000000e+00> : vector<8xf32>
    %3 = vector.multi_reduction <add>, %2, %cst_3 [1] : vector<8x64xf32> to vector<8xf32>
    %4 = vector.shape_cast %3 : vector<8xf32> to vector<8x1xf32>
    %cst_4 = arith.constant 6.400000e+01 : f32
    %5 = vector.broadcast %cst_4 : f32 to vector<8x1xf32>
    %6 = arith.divf %4, %5 : vector<8x1xf32>
    %7 = vector.broadcast %6 : vector<8x1xf32> to vector<8x64xf32>
    %8 = arith.subf %2, %7 : vector<8x64xf32>
    %9 = vector.broadcast %6 : vector<8x1xf32> to vector<8x64xf32>
    %10 = arith.subf %2, %9 : vector<8x64xf32>
    %11 = arith.mulf %8, %10 : vector<8x64xf32>
    %cst_5 = arith.constant dense<0.000000e+00> : vector<8xf32>
    %12 = vector.multi_reduction <add>, %11, %cst_5 [1] : vector<8x64xf32> to vector<8xf32>
    %13 = vector.shape_cast %12 : vector<8xf32> to vector<8x1xf32>
    %cst_6 = arith.constant 6.400000e+01 : f32
    %14 = vector.broadcast %cst_6 : f32 to vector<8x1xf32>
    %15 = arith.divf %13, %14 : vector<8x1xf32>
    %16 = vector.broadcast %6 : vector<8x1xf32> to vector<8x64xf32>
    %17 = arith.subf %2, %16 : vector<8x64xf32>
    %cst_7 = arith.constant 9.99999974E-6 : f32
    %18 = vector.broadcast %cst_7 : f32 to vector<8x1xf32>
    %19 = arith.addf %15, %18 : vector<8x1xf32>
    %20 = math.rsqrt %19 : vector<8x1xf32>
    %21 = vector.broadcast %20 : vector<8x1xf32> to vector<8x64xf32>
    %22 = arith.mulf %17, %21 : vector<8x64xf32>
    %c0_8 = arith.constant 0 : index
    %c0_9 = arith.constant 0 : index
    %23 = vector.load %arg3[%c0_8, %c0_9] : memref<1x64xf32, #tpu.memory_space<vmem>>, vector<1x64xf32>
    %24 = vector.broadcast %23 : vector<1x64xf32> to vector<8x64xf32>
    %25 = arith.mulf %22, %24 : vector<8x64xf32>
    %c0_10 = arith.constant 0 : index
    %c0_11 = arith.constant 0 : index
    %26 = vector.load %arg4[%c0_10, %c0_11] : memref<1x64xf32, #tpu.memory_space<vmem>>, vector<1x64xf32>
    %27 = vector.broadcast %26 : vector<1x64xf32> to vector<8x64xf32>
    %28 = arith.addf %25, %27 : vector<8x64xf32>
    %cst_12 = arith.constant 0.000000e+00 : f32
    %29 = vector.broadcast %cst_12 : f32 to vector<8x64xf32>
    %30 = arith.maximumf %28, %29 : vector<8x64xf32>
    %c0_13 = arith.constant 0 : index
    %c0_14 = arith.constant 0 : index
    %31 = vector.load %arg5[%c0_13, %c0_14] : memref<64x64xf32, #tpu.memory_space<vmem>>, vector<64x64xf32>
    %cst_15 = arith.constant dense<0.000000e+00> : vector<8x64xf32>
    %32 = tpu.matmul %30, %31, %cst_15 {dimension_numbers = #tpu.dot_dimension_numbers<[1], [0], [0], [1], [0, 0, 1, 1], [], []>, precision = #tpu.contract_precision<fp32>} : vector<8x64xf32>, vector<64x64xf32>, vector<8x64xf32> -> vector<8x64xf32>
    %cst_16 = arith.constant dense<0.000000e+00> : vector<8xf32>
    %33 = vector.multi_reduction <add>, %32, %cst_16 [1] : vector<8x64xf32> to vector<8xf32>
    %34 = vector.shape_cast %33 : vector<8xf32> to vector<8x1xf32>
    %cst_17 = arith.constant 6.400000e+01 : f32
    %35 = vector.broadcast %cst_17 : f32 to vector<8x1xf32>
    %36 = arith.divf %34, %35 : vector<8x1xf32>
    %37 = vector.broadcast %36 : vector<8x1xf32> to vector<8x64xf32>
    %38 = arith.subf %32, %37 : vector<8x64xf32>
    %39 = vector.broadcast %36 : vector<8x1xf32> to vector<8x64xf32>
    %40 = arith.subf %32, %39 : vector<8x64xf32>
    %41 = arith.mulf %38, %40 : vector<8x64xf32>
    %cst_18 = arith.constant dense<0.000000e+00> : vector<8xf32>
    %42 = vector.multi_reduction <add>, %41, %cst_18 [1] : vector<8x64xf32> to vector<8xf32>
    %43 = vector.shape_cast %42 : vector<8xf32> to vector<8x1xf32>
    %cst_19 = arith.constant 6.400000e+01 : f32
    %44 = vector.broadcast %cst_19 : f32 to vector<8x1xf32>
    %45 = arith.divf %43, %44 : vector<8x1xf32>
    %46 = vector.broadcast %36 : vector<8x1xf32> to vector<8x64xf32>
    %47 = arith.subf %32, %46 : vector<8x64xf32>
    %cst_20 = arith.constant 9.99999974E-6 : f32
    %48 = vector.broadcast %cst_20 : f32 to vector<8x1xf32>
    %49 = arith.addf %45, %48 : vector<8x1xf32>
    %50 = math.rsqrt %49 : vector<8x1xf32>
    %51 = vector.broadcast %50 : vector<8x1xf32> to vector<8x64xf32>
    %52 = arith.mulf %47, %51 : vector<8x64xf32>
    %c0_21 = arith.constant 0 : index
    %c0_22 = arith.constant 0 : index
    %53 = vector.load %arg6[%c0_21, %c0_22] : memref<1x64xf32, #tpu.memory_space<vmem>>, vector<1x64xf32>
    %54 = vector.broadcast %53 : vector<1x64xf32> to vector<8x64xf32>
    %55 = arith.mulf %52, %54 : vector<8x64xf32>
    %c0_23 = arith.constant 0 : index
    %c0_24 = arith.constant 0 : index
    %56 = vector.load %arg7[%c0_23, %c0_24] : memref<1x64xf32, #tpu.memory_space<vmem>>, vector<1x64xf32>
    %57 = vector.broadcast %56 : vector<1x64xf32> to vector<8x64xf32>
    %58 = arith.addf %55, %57 : vector<8x64xf32>
    %cst_25 = arith.constant 0.000000e+00 : f32
    %59 = vector.broadcast %cst_25 : f32 to vector<8x64xf32>
    %60 = arith.maximumf %58, %59 : vector<8x64xf32>
    %c0_26 = arith.constant 0 : index
    %c0_27 = arith.constant 0 : index
    %61 = vector.load %arg8[%c0_26, %c0_27] : memref<64x32xf32, #tpu.memory_space<vmem>>, vector<64x32xf32>
    %cst_28 = arith.constant dense<0.000000e+00> : vector<8x32xf32>
    %62 = tpu.matmul %60, %61, %cst_28 {dimension_numbers = #tpu.dot_dimension_numbers<[1], [0], [0], [1], [0, 0, 1, 1], [], []>, precision = #tpu.contract_precision<fp32>} : vector<8x64xf32>, vector<64x32xf32>, vector<8x32xf32> -> vector<8x32xf32>
    %c0_29 = arith.constant 0 : index
    %c0_30 = arith.constant 0 : index
    %63 = vector.load %arg9[%c0_29, %c0_30] : memref<8x32xf32, #tpu.memory_space<vmem>>, vector<8x32xf32>
    tpu.vector_store %arg9[%c0_29, %c0_30], %62 {strides = array<i32>} : memref<8x32xf32, #tpu.memory_space<vmem>>, vector<8x32xf32>,
    return
  }
  func.func @transform_0(%arg0: i32) -> (i32, i32) {
    %c0_i32 = arith.constant 0 : i32
    %c0_i32_0 = arith.constant 0 : i32
    return %arg0, %c0_i32 : i32, i32
  }
  func.func @transform_1(%arg0: i32) -> (i32, i32) {
    %c0_i32 = arith.constant 0 : i32
    %c0_i32_0 = arith.constant 0 : i32
    %c0_i32_1 = arith.constant 0 : i32
    return %c0_i32, %c0_i32_0 : i32, i32
  }
  func.func @transform_2(%arg0: i32) -> (i32, i32) {
    %c0_i32 = arith.constant 0 : i32
    %c0_i32_0 = arith.constant 0 : i32
    %c0_i32_1 = arith.constant 0 : i32
    return %c0_i32, %c0_i32_0 : i32, i32
  }
  func.func @transform_3(%arg0: i32) -> (i32, i32) {
    %c0_i32 = arith.constant 0 : i32
    %c0_i32_0 = arith.constant 0 : i32
    %c0_i32_1 = arith.constant 0 : i32
    return %c0_i32, %c0_i32_0 : i32, i32
  }
  func.func @transform_4(%arg0: i32) -> (i32, i32) {
    %c0_i32 = arith.constant 0 : i32
    %c0_i32_0 = arith.constant 0 : i32
    %c0_i32_1 = arith.constant 0 : i32
    return %c0_i32, %c0_i32_0 : i32, i32
  }
  func.func @transform_5(%arg0: i32) -> (i32, i32) {
    %c0_i32 = arith.constant 0 : i32
    %c0_i32_0 = arith.constant 0 : i32
    %c0_i32_1 = arith.constant 0 : i32
    return %c0_i32, %c0_i32_0 : i32, i32
  }
  func.func @transform_6(%arg0: i32) -> (i32, i32) {
    %c0_i32 = arith.constant 0 : i32
    %c0_i32_0 = arith.constant 0 : i32
    %c0_i32_1 = arith.constant 0 : i32
    return %c0_i32, %c0_i32_0 : i32, i32
  }
  func.func @transform_7(%arg0: i32) -> (i32, i32) {
    %c0_i32 = arith.constant 0 : i32
    %c0_i32_0 = arith.constant 0 : i32
    %c0_i32_1 = arith.constant 0 : i32
    return %c0_i32, %c0_i32_0 : i32, i32
  }
  func.func @transform_8(%arg0: i32) -> (i32, i32) {
    %c0_i32 = arith.constant 0 : i32
    %c0_i32_0 = arith.constant 0 : i32
    return %arg0, %c0_i32 : i32, i32
  }
}

</mosaic_0001>

<bundles_post_ra>
// kernel: tpu_custom_call.1
= control target key start
LH: loop header
LB: loop body
LE: loop exit
PB: predicated region body
PF: predicated region fallthrough
CT: control target
= control target key end

     0   :  { %v2377_v3 = vmov 0.0|0.0   ;;  %vm2378_vm0 = vmmov 0   ;;  %v2379_v8 = vmov 0.0   ;;  %vm35_vm1 = vcmask 261120   ;;  %s2757_s0 = inlined_call_operand.vmem [shape: f32[2,32], index: 0, kind: input, shape index: {}]   ;;  %s2758_s1 = inlined_call_operand.vmem [shape: f32[32,64], index: 1, kind: input, shape index: {}]   ;;  %s2759_s2 = inlined_call_operand.vmem [shape: f32[1,64], index: 2, kind: input, shape index: {}]   ;;  %s2760_s3 = inlined_call_operand.vmem [shape: f32[1,64], index: 3, kind: input, shape index: {}]   ;;  %s2761_s4 = inlined_call_operand.vmem [shape: f32[64,64], index: 4, kind: input, shape index: {}]   ;;  %s2762_s5 = inlined_call_operand.vmem [shape: f32[1,64], index: 5, kind: input, shape index: {}]   ;;  %s2763_s6 = inlined_call_operand.vmem [shape: f32[1,64], index: 6, kind: input, shape index: {}]   ;;  %s2764_s7 = inlined_call_operand.vmem [shape: f32[64,32], index: 7, kind: input, shape index: {}]   ;;  %s2765_s8 = inlined_call_operand.hbm [shape: f32[2,32], index: 8, kind: output, shape index: {}]  }
   0x1   :  { %v31_v0 = vld [vmem:[%s2758_s1] sm:$0xff]  ;;  %v32_v1 = vld [vmem:[%s2758_s1 + $0x8] sm:$0xff]  ;;  %v33_v2 = vld [vmem:[%s2758_s1 + $0x10] sm:$0xff]  ;;  %2141 = vmatprep.subr.bf16.mxu0 %v2377_v3  ;;  %1860 = vmatprep.mubr.msk.f32.mxu0 %vm2378_vm0, %v2379_v8 }
   0x2   :  { %v40_v4 = vand.u32 4294901760, %v31_v0  ;;  %v43_v5 = vand.u32 4294901760, %v32_v1  ;;  %v34_v6 = vld [vmem:[%s2758_s1 + $0x18] sm:$0xff]  ;;  %v46_v7 = vand.u32 4294901760, %v33_v2  ;;  %v30_v9 = vld [vmem:[%s2757_s0] sm:$0xff] }
   0x3   :  { %v49_v10 = vand.u32 4294901760, %v34_v6  ;;  %v37_v11 = vsel %vm35_vm1, %v30_v9, 0 }
   0x4   :  { %13 = vsyncpa [#allocation3], 0  ;;  %2135 = vmatprep.subr.bf16.mxu1 %v2377_v3  ;;  %1849 = vmatprep.mubr.msk.f32.mxu1 %vm2378_vm0, %v2379_v8  ;;  %v120_v12 = vsub.f32 %v31_v0, %v40_v4  ;;  %v127_v13 = vsub.f32 %v32_v1, %v43_v5  ;;  %v134_v14 = vsub.f32 %v33_v2, %v46_v7  ;;  %v108_v16 = vand.u32 4294901760, %v37_v11  ;;  %v556_v52 = vld [vmem:[%s2761_s4] sm:$0xff]  ;;  %v557_v53 = vld [vmem:[%s2761_s4 + $0x8] sm:$0xff] }
   0x5   :  { %v141_v15 = vsub.f32 %v34_v6, %v49_v10  ;;  %v2136_v17 = vpack.c.bf16 %v43_v5, %v40_v4  ;;  %v2139_v27 = vpack.c.bf16 %v49_v10, %v46_v7  ;;  %vm524_vm2 = vcmask 523264   ;;  %v558_v57 = vld [vmem:[%s2761_s4 + $0x10] sm:$0xff]  ;;  %v559_v58 = vld [vmem:[%s2761_s4 + $0x18] sm:$0xff]  ;;  %v560_v63 = vld [vmem:[%s2761_s4 + $0x20] sm:$0xff] }
   0x6   :  { %v121_v18 = vand.u32 4294901760, %v120_v12  ;;  %v128_v19 = vand.u32 4294901760, %v127_v13  ;;  %v135_v20 = vand.u32 4294901760, %v134_v14  ;;  %v109_v22 = vsub.f32 %v37_v11, %v108_v16  ;;  %v561_v0 = vld [vmem:[%s2761_s4 + $0x28] sm:$0xff]  ;;  %v562_v1 = vld [vmem:[%s2761_s4 + $0x30] sm:$0xff]  ;;  %v563_v7 = vld [vmem:[%s2761_s4 + $0x38] sm:$0xff] }
   0x7   :  { %v142_v21 = vand.u32 4294901760, %v141_v15  ;;  %2137 = vmatpush3.bf16.msra.mxu1 %v2136_v17  ;;  %v2148_v37 = vpack.c.bf16 %v127_v13, %v120_v12  ;;  %v2151_v38 = vpack.c.bf16 %v141_v15, %v134_v14  ;;  %v568_v54 = vand.u32 4294901760, %v556_v52 }
   0x8   :  { %v122_v23 = vsub.f32 %v120_v12, %v121_v18  ;;  %v129_v24 = vsub.f32 %v127_v13, %v128_v19  ;;  %v136_v25 = vsub.f32 %v134_v14, %v135_v20  ;;  %2138 = vmatprep.subr.bf16.mxu1 %v2377_v3  ;;  %v110_v28 = vand.u32 4294901760, %v109_v22 }
   0x9   :  { %v143_v26 = vsub.f32 %v141_v15, %v142_v21  ;;  %v2160_v39 = vpack.c.bf16 %v128_v19, %v121_v18  ;;  %v2163_v40 = vpack.c.bf16 %v142_v21, %v135_v20  ;;  %v571_v55 = vand.u32 4294901760, %v557_v53 }
   0xa   :  { %v123_v29 = vand.u32 4294901760, %v122_v23  ;;  %v130_v30 = vand.u32 4294901760, %v129_v24  ;;  %v137_v31 = vand.u32 4294901760, %v136_v25  ;;  %v111_v33 = vsub.f32 %v109_v22, %v110_v28 }
   0xb   :  { %v144_v32 = vand.u32 4294901760, %v143_v26  ;;  %2140 = vmatpush3.bf16.msra.mxu1 %v2139_v27  ;;  %v2486_v56 = vpack.c.bf16 %v571_v55, %v568_v54  ;;  %v574_v59 = vand.u32 4294901760, %v558_v57  ;;  %v577_v60 = vand.u32 4294901760, %v559_v58 }
   0xc   :  { %v2142_v34 = vpack.c.bf16 %v130_v30, %v123_v29  ;;  %2171 = vmatprep.subr.bf16.mxu1 %v2377_v3  ;;  %v112_v35 = vand.u32 4294901760, %v111_v33  ;;  %v2495_v61 = vsub.f32 %v556_v52, %v568_v54  ;;  %v2497_v62 = vsub.f32 %v557_v53, %v571_v55 }
   0xd   :  { %v2145_v36 = vpack.c.bf16 %v144_v32, %v137_v31  ;;  %v2509_v2 = vpack.c.bf16 %v577_v60, %v574_v59  ;;  %v2511_v4 = vsub.f32 %v558_v57, %v574_v59  ;;  %v2513_v5 = vsub.f32 %v559_v58, %v577_v60  ;;  %v1699_v60 = vld [vmem:[%s2759_s2] ss:$0 sm:$0xff] }
   0xe   :  { %2143 = vmatpush3.bf16.msra.mxu0 %v2142_v34  ;;  %1850 = vmatmul.mubr.f32.vlgmr.msra.gmra.mrb[0].mxu1 %v112_v35  ;;  %v580_v6 = vand.u32 4294901760, %v560_v63  ;;  %v583_v9 = vand.u32 4294901760, %v561_v0  ;;  %v586_v10 = vand.u32 4294901760, %v562_v1  ;;  %v589_v12 = vand.u32 4294901760, %v563_v7 }
   0xf   :  { %2144 = vmatprep.subr.bf16.mxu0 %v2377_v3  ;;  %1923 = vmatprep.mubr.msk.f32.mxu1 %vm2378_vm0, %v2379_v8  ;;  %v653_v18 = vand.u32 4294901760, %v2495_v61  ;;  %v660_v19 = vand.u32 4294901760, %v2497_v62  ;;  %v667_v24 = vand.u32 4294901760, %v2511_v4  ;;  %v674_v25 = vand.u32 4294901760, %v2513_v5 }
  0x10   :  { %2173 = vmatpush3.bf16.msra.mxu1 %v2486_v56  ;;  %v2519_v11 = vsub.f32 %v560_v63, %v580_v6  ;;  %v2522_v13 = vpack.c.bf16 %v583_v9, %v580_v6  ;;  %v2524_v14 = vsub.f32 %v561_v0, %v583_v9  ;;  %v2526_v15 = vsub.f32 %v562_v1, %v586_v10 }
  0x11   :  { %2174 = vmatprep.subr.bf16.mxu1 %v2377_v3  ;;  %v654_v20 = vsub.f32 %v2495_v61, %v653_v18  ;;  %v661_v21 = vsub.f32 %v2497_v62, %v660_v19  ;;  %v2223_v52 = vpack.c.bf16 %v674_v25, %v667_v24 }
  0x12   :  { %2146 = vmatpush3.bf16.msra.mxu0 %v2145_v36  ;;  %v681_v31 = vand.u32 4294901760, %v2519_v11  ;;  %v688_v32 = vand.u32 4294901760, %v2524_v14 }
  0x13   :  { %2147 = vmatprep.subr.bf16.mxu0 %v2377_v3  ;;  %v662_v23 = vand.u32 4294901760, %v661_v21 }
  0x14   :  { %2176 = vmatpush3.bf16.msra.mxu1 %v2509_v2  ;;  %v682_v34 = vsub.f32 %v2519_v11, %v681_v31  ;;  %v689_v35 = vsub.f32 %v2524_v14, %v688_v32  ;;  %v2226_v53 = vpack.c.bf16 %v688_v32, %v681_v31  ;;  %v1138_v32 = vld [vmem:[%s2764_s7 + $0x20] sm:$0xff] }
  0x15   :  { %1861 = vmatmul.mubr.f32.vlgmr.msra.gmra.mrb[0].mxu0 %v108_v16  ;;  %2177 = vmatprep.subr.bf16.mxu1 %v2377_v3 }
  0x16   :  { %2149 = vmatpush3.bf16.msra.mxu0 %v2148_v37  ;;  %1871 = vmatprep.mubr.msk.f32.mxu0 %vm2378_vm0, %v2379_v8  ;;  %v683_v36 = vand.u32 4294901760, %v682_v34  ;;  %v690_v37 = vand.u32 4294901760, %v689_v35 }
  0x17   :  { %2150 = vmatprep.subr.bf16.mxu0 %v2377_v3 }
  0x18   :  { %2179 = vmatpush3.bf16.msra.mxu1 %v2522_v13 }
  0x19   :  { %2180 = vmatprep.subr.bf16.mxu1 %v2377_v3 }
  0x1a   :  { %2152 = vmatpush3.bf16.msra.mxu0 %v2151_v38  ;;  %v695_v38 = vand.u32 4294901760, %v2526_v15 }
  0x1b   :  { %2153 = vmatprep.subr.bf16.mxu0 %v2377_v3 }
  0x1d   :  { %1872 = vmatmul.mubr.f32.vlgmr.msra.gmra.mrb[0].mxu0 %v109_v22  ;;  %v655_v22 = vand.u32 4294901760, %v654_v20 }
  0x1e   :  { %2155 = vmatpush3.bf16.msra.mxu0 %v2136_v17  ;;  %1882 = vmatprep.mubr.msk.f32.mxu0 %vm2378_vm0, %v2379_v8 }
  0x1f   :  { %2156 = vmatprep.subr.bf16.mxu0 %v2377_v3  ;;  %v2184_v26 = vpack.c.bf16 %v662_v23, %v655_v22  ;;  %v1136_v22 = vld [vmem:[%s2764_s7 + $0x10] sm:$0xff]  ;;  %v1137_v23 = vld [vmem:[%s2764_s7 + $0x18] sm:$0xff] }
  0x22   :  { %2158 = vmatpush3.bf16.msra.mxu0 %v2139_v27 }
  0x23   :  { %2159 = vmatprep.subr.bf16.mxu0 %v2377_v3 }
  0x25   :  { %1883 = vmatmul.mubr.f32.vlgmr.msra.gmra.mrb[0].mxu0 %v110_v28  ;;  %v675_v28 = vsub.f32 %v2513_v5, %v674_v25 }
  0x26   :  { %2161 = vmatpush3.bf16.msra.mxu0 %v2160_v39  ;;  %1893 = vmatprep.mubr.msk.f32.mxu0 %vm2378_vm0, %v2379_v8 }
  0x27   :  { %2162 = vmatprep.subr.bf16.mxu0 %v2377_v3  ;;  %v676_v30 = vand.u32 4294901760, %v675_v28 }
  0x2a   :  { %2164 = vmatpush3.bf16.msra.mxu0 %v2163_v40  ;;  %v2190_v40 = vpack.c.bf16 %v690_v37, %v683_v36 }
  0x2b   :  { %2165 = vmatprep.subr.bf16.mxu0 %v2377_v3 }
  0x2d   :  { %1894 = vmatmul.mubr.f32.vlgmr.msra.gmra.mrb[0].mxu0 %v108_v16 }
  0x2e   :  { %2167 = vmatpush3.bf16.msra.mxu0 %v2136_v17  ;;  %1904 = vmatprep.mubr.msk.f32.mxu0 %vm2378_vm0, %v2379_v8  ;;  %v2531_v17 = vpack.c.bf16 %v589_v12, %v586_v10 }
  0x2f   :  { %2168 = vmatprep.subr.bf16.mxu0 %v2377_v3 }
  0x30   :  { %2182 = vmatpush3.bf16.msra.mxu1 %v2531_v17 }
  0x31   :  { %2183 = vmatprep.subr.bf16.mxu1 %v2377_v3 }
  0x32   :  { %2170 = vmatpush3.bf16.msra.mxu0 %v2139_v27  ;;  %v668_v27 = vsub.f32 %v2511_v4, %v667_v24 }
  0x33   :  { %2255 = vmatprep.subr.bf16.mxu0 %v2377_v3 }
  0x34   :  { %v669_v29 = vand.u32 4294901760, %v668_v27  ;;  %v1155_v27 = vand.u32 4294901760, %v1137_v23 }
  0x35   :  { %1905 = vmatmul.mubr.f32.vlgmr.msra.gmra.mrb[0].mxu0 %v108_v16  ;;  %v2528_v16 = vsub.f32 %v563_v7, %v589_v12 }
  0x36   :  { %2056 = vmatprep.mubr.msk.f32.mxu0 %vm2378_vm0, %v2379_v8  ;;  %v2187_v33 = vpack.c.bf16 %v676_v30, %v669_v29  ;;  %v2640_v31 = vsub.f32 %v1137_v23, %v1155_v27 }
  0x37   :  { %v702_v39 = vand.u32 4294901760, %v2528_v16 }
  0x38   :  { %v1252_v37 = vand.u32 4294901760, %v2640_v31 }
  0x39   :  { %v2229_v54 = vpack.c.bf16 %v702_v39, %v695_v38 }
  0xe1   :  { %v114_v41 = vpop.f32.mrb[0].mxu1 }
  0xe2   :  { %v1851_v42 = vpop.f32.mrb[1].mxu1 }
  0xe3   :  { %v703_v42 = vsub.f32 %v2528_v16, %v702_v39 }
 0x108   :  { %v520_v43 = vpop.f32.mrb[0].mxu0 }
 0x109   :  { %v2315_v44 = vadd.f32 %v520_v43, %v114_v41  ;;  %v1906_v45 = vpop.f32.mrb[1].mxu0  ;;  %v696_v41 = vsub.f32 %v2526_v15, %v695_v38  ;;  %v1158_v38 = vand.u32 4294901760, %v1138_v32 }
 0x10b   :  { %v525_v46 = vsel %vm524_vm2, %v2315_v44, 0.0  ;;  %v697_v43 = vand.u32 4294901760, %v696_v41 }
 0x10c   :  { %526 = vadd.xlane.f32.xlu0 %v525_v46  ;;  %v2196_v46 = vpack.c.bf16 %v2497_v62, %v2495_v61  ;;  %v1700_v62 = vld [vmem:[%s2760_s3] ss:$0 sm:$0xff] }
 0x199   :  { %v527_v47 = vpop.xlane.xlu0 %526 }
 0x19a   :  { %v529_v48 = vmul.f32 0.015625, %v527_v47  ;;  %v2199_v47 = vpack.c.bf16 %v2513_v5, %v2511_v4 }
 0x19c   :  { %v2475_v49 = vsub.f32 %v2315_v44, %v529_v48  ;;  %v704_v44 = vand.u32 4294901760, %v703_v42  ;;  %v2202_v48 = vpack.c.bf16 %v2524_v14, %v2519_v11  ;;  %v1253_v42 = vsub.f32 %v2640_v31, %v1252_v37 }
 0x19e   :  { %v531_v50 = vmul.f32 %v2475_v49, %v2475_v49  ;;  %v2193_v45 = vpack.c.bf16 %v704_v44, %v697_v43  ;;  %v2652_v43 = vsub.f32 %v1138_v32, %v1158_v38 }
 0x1a0   :  { %v532_v51 = vsel %vm524_vm2, %v531_v50, 0.0  ;;  %v2205_v50 = vpack.c.bf16 %v2528_v16, %v2526_v15  ;;  %v1134_v16 = vld [vmem:[%s2764_s7] sm:$0xff] }
 0x1a1   :  { %533 = vadd.xlane.f32.xlu0 %v532_v51  ;;  %v2220_v51 = vpack.c.bf16 %v660_v19, %v653_v18  ;;  %v1146_v18 = vand.u32 4294901760, %v1134_v16 }
 0x1a3   :  { %v2620_v20 = vsub.f32 %v1134_v16, %v1146_v18 }
 0x1a5   :  { %v1231_v24 = vand.u32 4294901760, %v2620_v20 }
 0x1a7   :  { %v1232_v28 = vsub.f32 %v2620_v20, %v1231_v24 }
 0x1a9   :  { %v1233_v34 = vand.u32 4294901760, %v1232_v28 }
 0x22e   :  { %v534_v55 = vpop.xlane.xlu0 %533 }
 0x22f   :  { %v535_v57 = vmul.f32 0.015625, %v534_v55 }
 0x231   :  { %v536_v58 = vadd.f32 1e-05, %v535_v57 }
 0x233   :  { %2349 = vrsqrt.f32 %v536_v58 }
 0x23d   :  { %v2350_v59 = vpop.eup %2349 }
 0x23e   :  { %v538_v61 = vmul.f32 %v2350_v59, %v2475_v49 }
 0x240   :  { %v546_v63 = vmul.f32 %v1699_v60, %v538_v61 }
 0x242   :  { %v554_v0 = vadd.f32 %v1700_v62, %v546_v63 }
 0x244   :  { %v555_v1 = vmax.f32 %v554_v0, 0.0 }
 0x246   :  { %v565_v4 = vsel %vm524_vm2, %v555_v1, 0 }
 0x247   :  { %v640_v5 = vand.u32 4294901760, %v565_v4 }
 0x249   :  { %v641_v6 = vsub.f32 %v565_v4, %v640_v5 }
 0x24b   :  { %v642_v7 = vand.u32 4294901760, %v641_v6 }
 0x24d   :  { %v643_v9 = vsub.f32 %v641_v6, %v642_v7 }
 0x24f   :  { %v644_v10 = vand.u32 4294901760, %v643_v9 }
 0x251   :  { %1924 = vmatmul.mubr.f32.vlgmr.msra.gmra.mrb[2].mxu1 %v644_v10 }
 0x252   :  { %2185 = vmatpush3.bf16.msra.mxu1 %v2184_v26  ;;  %1942 = vmatprep.mubr.msk.f32.mxu1 %vm2378_vm0, %v2379_v8  ;;  %v1152_v26 = vand.u32 4294901760, %v1136_v22 }
 0x253   :  { %2186 = vmatprep.subr.bf16.mxu1 %v2377_v3 }
 0x254   :  { %v2638_v30 = vsub.f32 %v1136_v22, %v1152_v26 }
 0x256   :  { %2188 = vmatpush3.bf16.msra.mxu1 %v2187_v33  ;;  %v1139_v33 = vld [vmem:[%s2764_s7 + $0x28] sm:$0xff]  ;;  %v1245_v36 = vand.u32 4294901760, %v2638_v30 }
 0x257   :  { %2189 = vmatprep.subr.bf16.mxu1 %v2377_v3  ;;  %v1161_v39 = vand.u32 4294901760, %v1139_v33 }
 0x258   :  { %v1246_v41 = vsub.f32 %v2638_v30, %v1245_v36  ;;  %v2295_v16 = vpack.c.bf16 %v1252_v37, %v1245_v36 }
 0x259   :  { %v2654_v44 = vsub.f32 %v1139_v33, %v1161_v39 }
 0x25a   :  { %2191 = vmatpush3.bf16.msra.mxu1 %v2190_v40 }
 0x25b   :  { %2192 = vmatprep.subr.bf16.mxu1 %v2377_v3 }
 0x25e   :  { %2194 = vmatpush3.bf16.msra.mxu1 %v2193_v45  ;;  %v1140_v45 = vld [vmem:[%s2764_s7 + $0x30] sm:$0xff] }
 0x25f   :  { %2195 = vmatprep.subr.bf16.mxu1 %v2377_v3 }
 0x261   :  { %1943 = vmatmul.mubr.f32.vlgmr.msra.gmra.mrb[2].mxu1 %v640_v5 }
 0x262   :  { %2197 = vmatpush3.bf16.msra.mxu1 %v2196_v46  ;;  %1961 = vmatprep.mubr.msk.f32.mxu1 %vm2378_vm0, %v2379_v8  ;;  %v1141_v46 = vld [vmem:[%s2764_s7 + $0x38] sm:$0xff] }
 0x263   :  { %2198 = vmatprep.subr.bf16.mxu1 %v2377_v3 }
 0x266   :  { %2200 = vmatpush3.bf16.msra.mxu1 %v2199_v47  ;;  %v1247_v47 = vand.u32 4294901760, %v1246_v41 }
 0x267   :  { %2201 = vmatprep.subr.bf16.mxu1 %v2377_v3 }
 0x26a   :  { %2203 = vmatpush3.bf16.msra.mxu1 %v2202_v48  ;;  %v1254_v48 = vand.u32 4294901760, %v1253_v42 }
 0x26b   :  { %2204 = vmatprep.subr.bf16.mxu1 %v2377_v3 }
 0x26e   :  { %2206 = vmatpush3.bf16.msra.mxu1 %v2205_v50  ;;  %v1164_v50 = vand.u32 4294901760, %v1140_v45 }
 0x26f   :  { %2207 = vmatprep.subr.bf16.mxu1 %v2377_v3 }
 0x270   :  { %v2665_v55 = vsub.f32 %v1140_v45, %v1164_v50 }
 0x271   :  { %1962 = vmatmul.mubr.f32.vlgmr.msra.gmra.mrb[2].mxu1 %v641_v6  ;;  %v2679_v6 = vpack.c.bf16 %v1155_v27, %v1152_v26  ;;  %v1701_v27 = vld [vmem:[%s2762_s5] ss:$0 sm:$0xff] }
 0x272   :  { %2209 = vmatpush3.bf16.msra.mxu1 %v2486_v56  ;;  %1980 = vmatprep.mubr.msk.f32.mxu1 %vm2378_vm0, %v2379_v8  ;;  %v1273_v60 = vand.u32 4294901760, %v2665_v55 }
 0x273   :  { %2210 = vmatprep.subr.bf16.mxu1 %v2377_v3 }
 0x274   :  { %v1274_v1 = vsub.f32 %v2665_v55, %v1273_v60 }
 0x276   :  { %2212 = vmatpush3.bf16.msra.mxu1 %v2509_v2 }
 0x277   :  { %2213 = vmatprep.subr.bf16.mxu1 %v2377_v3 }
 0x27a   :  { %2215 = vmatpush3.bf16.msra.mxu1 %v2522_v13 }
 0x27b   :  { %2216 = vmatprep.subr.bf16.mxu1 %v2377_v3 }
 0x27e   :  { %2218 = vmatpush3.bf16.msra.mxu1 %v2531_v17 }
 0x27f   :  { %2219 = vmatprep.subr.bf16.mxu1 %v2377_v3 }
 0x281   :  { %1981 = vmatmul.mubr.f32.vlgmr.msra.gmra.mrb[2].mxu1 %v642_v7  ;;  %v1275_v7 = vand.u32 4294901760, %v1274_v1 }
 0x282   :  { %2221 = vmatpush3.bf16.msra.mxu1 %v2220_v51  ;;  %1999 = vmatprep.mubr.msk.f32.mxu1 %vm2378_vm0, %v2379_v8  ;;  %v1167_v51 = vand.u32 4294901760, %v1141_v46 }
 0x283   :  { %2222 = vmatprep.subr.bf16.mxu1 %v2377_v3 }
 0x284   :  { %v2667_v57 = vsub.f32 %v1141_v46, %v1167_v51 }
 0x286   :  { %2224 = vmatpush3.bf16.msra.mxu1 %v2223_v52  ;;  %v1259_v52 = vand.u32 4294901760, %v2652_v43  ;;  %v1280_v61 = vand.u32 4294901760, %v2667_v57 }
 0x287   :  { %2225 = vmatprep.subr.bf16.mxu1 %v2377_v3 }
 0x288   :  { %v1260_v58 = vsub.f32 %v2652_v43, %v1259_v52  ;;  %v1281_v4 = vsub.f32 %v2667_v57, %v1280_v61 }
 0x28a   :  { %2227 = vmatpush3.bf16.msra.mxu1 %v2226_v53  ;;  %v1266_v53 = vand.u32 4294901760, %v2654_v44  ;;  %v1261_v62 = vand.u32 4294901760, %v1260_v58  ;;  %v1282_v9 = vand.u32 4294901760, %v1281_v4 }
 0x28b   :  { %2228 = vmatprep.subr.bf16.mxu1 %v2377_v3 }
 0x28c   :  { %v1267_v59 = vsub.f32 %v2654_v44, %v1266_v53  ;;  %v2265_v10 = vpack.c.bf16 %v1282_v9, %v1275_v7 }
 0x28e   :  { %2230 = vmatpush3.bf16.msra.mxu1 %v2229_v54  ;;  %v2259_v54 = vpack.c.bf16 %v1254_v48, %v1247_v47  ;;  %v1268_v63 = vand.u32 4294901760, %v1267_v59 }
 0x28f   :  { %2231 = vmatprep.subr.bf16.mxu1 %v2377_v3 }
 0x291   :  { %2000 = vmatmul.mubr.f32.vlgmr.msra.gmra.mrb[2].mxu1 %v640_v5 }
 0x292   :  { %2233 = vmatpush3.bf16.msra.mxu1 %v2486_v56  ;;  %2018 = vmatprep.mubr.msk.f32.mxu1 %vm2378_vm0, %v2379_v8 }
 0x293   :  { %2234 = vmatprep.subr.bf16.mxu1 %v2377_v3 }
 0x296   :  { %2236 = vmatpush3.bf16.msra.mxu1 %v2509_v2 }
 0x297   :  { %2237 = vmatprep.subr.bf16.mxu1 %v2377_v3 }
 0x29a   :  { %2239 = vmatpush3.bf16.msra.mxu1 %v2522_v13 }
 0x29b   :  { %2240 = vmatprep.subr.bf16.mxu1 %v2377_v3 }
 0x29e   :  { %2242 = vmatpush3.bf16.msra.mxu1 %v2531_v17  ;;  %v1135_v17 = vld [vmem:[%s2764_s7 + $0x8] sm:$0xff] }
 0x29f   :  { %2243 = vmatprep.subr.bf16.mxu1 %v2377_v3  ;;  %v1149_v19 = vand.u32 4294901760, %v1135_v17 }
 0x2a1   :  { %2019 = vmatmul.mubr.f32.vlgmr.msra.gmra.mrb[2].mxu1 %v640_v5  ;;  %v2622_v21 = vsub.f32 %v1135_v17, %v1149_v19  ;;  %v2674_v0 = vpack.c.bf16 %v1149_v19, %v1146_v18  ;;  %v2262_v5 = vpack.c.bf16 %v1268_v63, %v1261_v62  ;;  %v2298_v17 = vpack.c.bf16 %v1266_v53, %v1259_v52 }
 0x2a2   :  { %2037 = vmatprep.mubr.msk.f32.mxu1 %vm2378_vm0, %v2379_v8  ;;  %v2301_v18 = vpack.c.bf16 %v1280_v61, %v1273_v60 }
 0x2a3   :  { %v1238_v25 = vand.u32 4294901760, %v2622_v21  ;;  %2245 = vmatpush3.bf16.msra.mxu1 %v2674_v0 }
 0x2a4   :  { %2246 = vmatprep.subr.bf16.mxu1 %v2377_v3 }
 0x2a5   :  { %v1239_v29 = vsub.f32 %v2622_v21, %v1238_v25 }
 0x2a7   :  { %v1240_v35 = vand.u32 4294901760, %v1239_v29  ;;  %2248 = vmatpush3.bf16.msra.mxu1 %v2679_v6 }
 0x2a8   :  { %2249 = vmatprep.subr.bf16.mxu1 %v2377_v3 }
 0x2a9   :  { %v2256_v40 = vpack.c.bf16 %v1240_v35, %v1233_v34 }
 0x2ab   :  { %2257 = vmatpush3.bf16.msra.mxu0 %v2256_v40 }
 0x2ac   :  { %2258 = vmatprep.subr.bf16.mxu0 %v2377_v3 }
 0x2af   :  { %2260 = vmatpush3.bf16.msra.mxu0 %v2259_v54 }
 0x2b0   :  { %2261 = vmatprep.subr.bf16.mxu0 %v2377_v3 }
 0x2b3   :  { %2263 = vmatpush3.bf16.msra.mxu0 %v2262_v5 }
 0x2b4   :  { %2264 = vmatprep.subr.bf16.mxu0 %v2377_v3 }
 0x2b7   :  { %2266 = vmatpush3.bf16.msra.mxu0 %v2265_v10 }
 0x2b8   :  { %2267 = vmatprep.subr.bf16.mxu0 %v2377_v3 }
 0x374   :  { %v1100_v49 = vpop.f32.mrb[2].mxu1 }
 0x375   :  { %v2020_v56 = vpop.f32.mrb[3].mxu1  ;;  %v1104_v11 = vsel %vm524_vm2, %v1100_v49, 0.0 }
 0x376   :  { %1105 = vadd.xlane.f32.xlu1 %v1104_v11  ;;  %v2688_v56 = vpack.c.bf16 %v1161_v39, %v1158_v38  ;;  %v2271_v11 = vpack.c.bf16 %v2640_v31, %v2638_v30 }
 0x378   :  { %2251 = vmatpush3.bf16.msra.mxu1 %v2688_v56 }
 0x379   :  { %2252 = vmatprep.subr.bf16.mxu1 %v2377_v3 }
 0x403   :  { %v1106_v2 = vpop.xlane.xlu1 %1105 }
 0x404   :  { %v1107_v12 = vmul.f32 0.015625, %v1106_v2  ;;  %v2694_v2 = vpack.c.bf16 %v1167_v51, %v1164_v50 }
 0x406   :  { %v2609_v14 = vsub.f32 %v1100_v49, %v1107_v12  ;;  %v2268_v49 = vpack.c.bf16 %v2622_v21, %v2620_v20  ;;  %2254 = vmatpush3.bf16.msra.mxu1 %v2694_v2  ;;  %v2274_v12 = vpack.c.bf16 %v2654_v44, %v2652_v43  ;;  %v1702_v20 = vld [vmem:[%s2763_s6] ss:$0 sm:$0xff] }
 0x408   :  { %v1109_v13 = vmul.f32 %v2609_v14, %v2609_v14 }
 0x40a   :  { %v1110_v15 = vsel %vm524_vm2, %v1109_v13, 0.0  ;;  %v2277_v13 = vpack.c.bf16 %v2667_v57, %v2665_v55 }
 0x40b   :  { %1111 = vadd.xlane.f32.xlu1 %v1110_v15  ;;  %v2292_v15 = vpack.c.bf16 %v1238_v25, %v1231_v24 }
 0x498   :  { %v1112_v19 = vpop.xlane.xlu1 %1111 }
 0x499   :  { %v1113_v22 = vmul.f32 0.015625, %v1112_v19 }
 0x49b   :  { %v1114_v23 = vadd.f32 1e-05, %v1113_v22 }
 0x49d   :  { %2351 = vrsqrt.f32 %v1114_v23 }
 0x4a7   :  { %v2352_v26 = vpop.eup %2351 }
 0x4a8   :  { %v1116_v28 = vmul.f32 %v2352_v26, %v2609_v14 }
 0x4aa   :  { %v1124_v21 = vmul.f32 %v1701_v27, %v1116_v28 }
 0x4ac   :  { %v1132_v24 = vadd.f32 %v1702_v20, %v1124_v21 }
 0x4ae   :  { %v1133_v25 = vmax.f32 %v1132_v24, 0.0 }
 0x4b0   :  { %v1143_v29 = vsel %vm524_vm2, %v1133_v25, 0 }
 0x4b1   :  { %v1218_v30 = vand.u32 4294901760, %v1143_v29 }
 0x4b3   :  { %v1219_v31 = vsub.f32 %v1143_v29, %v1218_v30  ;;  %2057 = vmatmul.mubr.f32.vlgmr.msra.gmra.mrb[2].mxu0 %v1218_v30 }
 0x4b4   :  { %2269 = vmatpush3.bf16.msra.mxu0 %v2268_v49  ;;  %2075 = vmatprep.mubr.msk.f32.mxu0 %vm2378_vm0, %v2379_v8 }
 0x4b5   :  { %2270 = vmatprep.subr.bf16.mxu0 %v2377_v3  ;;  %v1220_v32 = vand.u32 4294901760, %v1219_v31 }
 0x4b7   :  { %v1221_v14 = vsub.f32 %v1219_v31, %v1220_v32 }
 0x4b8   :  { %2272 = vmatpush3.bf16.msra.mxu0 %v2271_v11 }
 0x4b9   :  { %2273 = vmatprep.subr.bf16.mxu0 %v2377_v3  ;;  %v1222_v33 = vand.u32 4294901760, %v1221_v14 }
 0x4bb   :  { %2038 = vmatmul.mubr.f32.vlgmr.msra.gmra.mrb[4].mxu1 %v1222_v33 }
 0x4bc   :  { %2275 = vmatpush3.bf16.msra.mxu0 %v2274_v12 }
 0x4bd   :  { %2276 = vmatprep.subr.bf16.mxu0 %v2377_v3 }
 0x4c0   :  { %2278 = vmatpush3.bf16.msra.mxu0 %v2277_v13 }
 0x4c1   :  { %2279 = vmatprep.subr.bf16.mxu0 %v2377_v3 }
 0x4c3   :  { %2076 = vmatmul.mubr.f32.vlgmr.msra.gmra.mrb[2].mxu0 %v1219_v31 }
 0x4c4   :  { %2281 = vmatpush3.bf16.msra.mxu0 %v2674_v0  ;;  %2094 = vmatprep.mubr.msk.f32.mxu0 %vm2378_vm0, %v2379_v8 }
 0x4c5   :  { %2282 = vmatprep.subr.bf16.mxu0 %v2377_v3 }
 0x4c8   :  { %2284 = vmatpush3.bf16.msra.mxu0 %v2679_v6 }
 0x4c9   :  { %2285 = vmatprep.subr.bf16.mxu0 %v2377_v3 }
 0x4cc   :  { %2287 = vmatpush3.bf16.msra.mxu0 %v2688_v56 }
 0x4cd   :  { %2288 = vmatprep.subr.bf16.mxu0 %v2377_v3 }
 0x4d0   :  { %2290 = vmatpush3.bf16.msra.mxu0 %v2694_v2 }
 0x4d1   :  { %2291 = vmatprep.subr.bf16.mxu0 %v2377_v3 }
 0x4d3   :  { %2095 = vmatmul.mubr.f32.vlgmr.msra.gmra.mrb[2].mxu0 %v1220_v32 }
 0x4d4   :  { %2293 = vmatpush3.bf16.msra.mxu0 %v2292_v15  ;;  %2113 = vmatprep.mubr.msk.f32.mxu0 %vm2378_vm0, %v2379_v8 }
 0x4d5   :  { %2294 = vmatprep.subr.bf16.mxu0 %v2377_v3 }
 0x4d8   :  { %2296 = vmatpush3.bf16.msra.mxu0 %v2295_v16 }
 0x4d9   :  { %2297 = vmatprep.subr.bf16.mxu0 %v2377_v3 }
 0x4dc   :  { %2299 = vmatpush3.bf16.msra.mxu0 %v2298_v17 }
 0x4dd   :  { %2300 = vmatprep.subr.bf16.mxu0 %v2377_v3 }
 0x4e0   :  { %2302 = vmatpush3.bf16.msra.mxu0 %v2301_v18 }
 0x4e1   :  { %2303 = vmatprep.subr.bf16.mxu0 %v2377_v3 }
 0x4e3   :  { %2114 = vmatmul.mubr.f32.vlgmr.msra.gmra.mrb[2].mxu0 %v1218_v30 }
 0x4e4   :  { %2305 = vmatpush3.bf16.msra.mxu0 %v2674_v0  ;;  %2132 = vmatprep.mubr.msk.f32.mxu0 %vm2378_vm0, %v2379_v8 }
 0x4e5   :  { %2306 = vmatprep.subr.bf16.mxu0 %v2377_v3 }
 0x4e8   :  { %2308 = vmatpush3.bf16.msra.mxu0 %v2679_v6 }
 0x4e9   :  { %2309 = vmatprep.subr.bf16.mxu0 %v2377_v3 }
 0x4ec   :  { %2311 = vmatpush3.bf16.msra.mxu0 %v2688_v56 }
 0x4ed   :  { %2312 = vmatprep.subr.bf16.mxu0 %v2377_v3 }
 0x4f0   :  { %2314 = vmatpush3.bf16.msra.mxu0 %v2694_v2 }
 0x4f3   :  { %2133 = vmatmul.mubr.f32.vlgmr.msra.gmra.mrb[2].mxu0 %v1218_v30 }
 0x58e   :  { %v1224_v34 = vpop.f32.mrb[4].mxu1 }
 0x58f   :  { %v2039_v35 = vpop.f32.mrb[5].mxu1 }
 0x5c6   :  { %v1678_v36 = vpop.f32.mrb[2].mxu0 }
 0x5c7   :  { %v2316_v37 = vadd.f32 %v1678_v36, %v1224_v34  ;;  %v2134_v38 = vpop.f32.mrb[3].mxu0 }
 0x5c9   :  { %1682 = vst.msk [vmem:[#allocation2] sm:$0xff] %vm35_vm1, %v2316_v37 }
 0x5ca   :  { %1687 = vsyncadd [#allocation3], 96  ;;  %s2380_s5 = smov [#allocation2]  }
 0x5cb   :  { %s1688_s6 = sshll.u32 %s2380_s5, 4  ;;  %s1689_s6 = int_to_ptr.vmem [resolvable:$true] %s1688_s6 }
 0x5cc   :  { %s2353_s25 = scalar_lea.vmem %s1689_s6, 32  ;;  %s2357_s26 = scalar_lea.vmem %s1689_s6, 128 }
 0x5cd   :  { %p2354_p0 = scmp.ne.s32.totalorder %s1689_s6, %s2353_s25  ;;  %p2358_p1 = scmp.lt.s32.totalorder %s1689_s6, %s1689_s6 }
 0x5ce   :  { %p2359_p2 = scmp.lt.s32.totalorder %s2357_s26, %s2353_s25 }
 0x5d0   :  { %p2360_p3 = por %p2359_p2, %p2358_p1 }
 0x5d2   :  { %p2361_p4 = pnand %p2360_p3, %p2354_p0 }
 0x5d4   :  { %2364 = shalt.err (!%p2361_p4)
}
 0x5d5   :  { %s2365_s4 = scalar_lea.hbm %s2765_s8, 32 }
 0x5d6   :  { %p2366_p5 = scmp.ne.s32.totalorder %s2765_s8, %s2365_s4  ;;  %p2369_p6 = scmp.lt.u32.totalorder %s2365_s4, %s2765_s8 }
 0x5d8   :  { %p2371_p7 = pnand %p2369_p6, %p2366_p5 }
 0x5da   :  { %2374 = shalt.err (!%p2371_p7)
}
 0x5db   :  { %s2381_s3 = smov 32   ;;  %s2382_s10 = smov 2  }
 0x5dc   :  { %1694 = dma.vmem_to_hbm [thread:$0]  %s1689_s6, 32, %s2765_s8, [#allocation3], %s2381_s3, %s2381_s3, %s2382_s10  }
 0x5dd   :  { %2375 = dma.done.wait [#allocation3], 128  }
 0x5de   :  { %2376 = vsyncadd [#allocation3], 4294967168 }
 0x5df   :  { %1698 = vsyncpa [#allocation3], 1 }

</bundles_post_ra>
